<compile_context>
chip_gen: v7x
topology: tpu7x:2x2x1
jax: 0.10.0
libtpu: 0.0.40
codegen_flags: <defaults>
</compile_context>

<pallas_src>
import jax
import jax.numpy as jnp
from jax import lax
from jax.experimental import pallas as pl
from jax.experimental.pallas import tpu as pltpu


def _round_up(v, m):
    return ((v + m - 1) // m) * m


def _pick_row_tile(m, want):
    """Rows per grid step (in packed-row space).

    Multiple of 128 when m > 128; clamped so the grid keeps >= 4 steps when
    possible (pipelining + the two v7x TensorCores on the 'parallel' axis).
    """
    if m <= 128:
        return m
    rt = (min(max(int(want), 128), m) // 128) * 128
    rt = max(rt, 128)
    while rt > 128 and (m + rt - 1) // rt < 4:
        rt = max(128, ((rt // 2) // 128) * 128)
    return rt


def _make_qos_kernel(n_layers, k):
    """Fused packed-row MLP + sigmoid kernel.

    Refs: x (rt_p, k*D) in X.dtype,
          then per MXU layer: W_bd (k*out, k*in) in X.dtype, bias (k*out, 1) f32,
          then (if n_layers > 1) w_col (in_f, 1) f32 and b_last (1, 1) f32,
          then out (1, k, rt_p) in X.dtype.
    """
    n_mm = n_layers - 1 if n_layers > 1 else 1   # layers evaluated on the MXU

    def kernel(x_ref, *refs):
        out_ref = refs[-1]
        wb = refs[:-1]
        x = x_ref[...]                                   # (rt_p, k*D)

        # Layer 0: h^T = W0_bd @ x^T -- contract the feature dim of BOTH
        # operands (QK^T-style dot_general) so the big X tile is never
        # transposed; rows land in the lane dimension.
        h = lax.dot_general(wb[0][...], x, (((1,), (1,)), ((), ())),
                            preferred_element_type=jnp.float32)
        h = h + wb[1][...]                               # (k*out0, rt_p) f32

        # Hidden layers: ReLU, keep activations in X.dtype (bf16 in prod),
        # accumulate in f32 on the MXU.
        for li in range(1, n_mm):
            a = jnp.maximum(h, 0.0).astype(x.dtype)
            h = jnp.dot(wb[2 * li][...], a,
                        preferred_element_type=jnp.float32) + wb[2 * li + 1][...]

        if n_layers == 1:
            logits = h                                   # out0 == 1 -> (k, rt_p)
        else:
            # Final Linear(in_f, 1) on the VPU: broadcast-mul by the f32 weight
            # column + sublane reduce per packed-row group (no 1-row MXU matmul).
            a = jnp.maximum(h, 0.0)                      # (k*in_f, rt_p) f32
            w_col = wb[2 * n_mm][...]                    # (in_f, 1) f32
            b_last = wb[2 * n_mm + 1][...]               # (1, 1)   f32
            in_f = w_col.shape[0]
            pieces = [
                jnp.sum(a[j * in_f:(j + 1) * in_f, :] * w_col,
                        axis=0, keepdims=True)
                for j in range(k)
            ]
            logits = pieces[0] if k == 1 else jnp.concatenate(pieces, axis=0)
            logits = logits + b_last                     # (k, rt_p)

        # Logits are lane-dense: one contiguous writeback per grid step.
        out_ref[...] = jax.nn.sigmoid(logits).astype(out_ref.dtype).reshape(
            out_ref.shape)

    return kernel


def init_qos_params(key, input_dims, n_layers, hidden_units):
    """Parameter init mirroring nn.Linear shapes (torch layout: W (out,in), b (out,1))."""
    dims = []
    in_f = input_dims
    for _ in range(n_layers - 1):
        dims.append((in_f, hidden_units))
        in_f = hidden_units
    dims.append((in_f, 1))

    params = []
    for (fin, fout) in dims:
        key, kw, kb = jax.random.split(key, 3)
        bound = 1.0 / (fin ** 0.5)
        w = jax.random.uniform(kw, (fout, fin), jnp.float32, -bound, bound)
        b = jax.random.uniform(kb, (fout, 1), jnp.float32, -bound, bound)
        params.append((w, b))
    return params


def qos_forward(X, primitive_params, params, *, row_tile=16384, x_buffers=None):
    """Pallas implementation of QualityOfSuperquadric.forward.

    X: (B, P, D) features.  bf16 recommended in production (halves HBM read
       traffic); the kernel also emits its output in X.dtype.
    params: list of (W (out,in), b (out,1)) in torch Linear layout.
    row_tile: original rows per grid step (default 16384).
    x_buffers: optional pipeline depth for the X block (e.g. 3 to sweep on v6e).
    Returns primitive_params dict extended with `qos` of shape (B, P).
    """
    B, P, D = X.shape
    M = B * P
    n_layers = len(params)
    x_dtype = X.dtype
    n_mm = n_layers - 1 if n_layers > 1 else 1

    # --- Row packing: fold k consecutive rows into the lane dim (k*D == 128)
    # so the X block is lane-dense.  Row-major reshape => zero-copy in HBM.
    k = 1
    if 0 < D < 128 and 128 % D == 0 and (128 // D) <= 16 and M % (128 // D) == 0:
        k = 128 // D
    M_p, D_p = M // k, k * D
    x_p = X.reshape(M_p, D_p)

    rt_p = _pick_row_tile(M_p, max(128, int(row_tile) // k))
    num_tiles = pl.cdiv(M_p, rt_p)

    # --- Flatten parameters: MXU-layer weights block-diag over the k packed
    # rows and cast to X.dtype; biases pre-tiled once (f32, added once per
    # layer); final layer passed as an f32 column for the VPU reduce.
    flat, in_specs = [], []
    if x_buffers is None:
        x_spec = pl.BlockSpec((rt_p, D_p), lambda i: (i, 0))
    else:
        x_spec = pl.BlockSpec((rt_p, D_p), lambda i: (i, 0),
                              pipeline_mode=pl.Buffered(int(x_buffers)))
    in_specs.append(x_spec)

    for li in range(n_mm):
        w, b = params[li]
        b = b.reshape(-1, 1)
        if k > 1:
            w = jnp.kron(jnp.eye(k, dtype=w.dtype), w)   # (k*out, k*in) block-diag
            b = jnp.tile(b, (k, 1))
        flat += [w.astype(x_dtype), b.astype(jnp.float32)]
        in_specs += [pl.BlockSpec(w.shape, lambda i: (0, 0)),   # VMEM-resident
                     pl.BlockSpec(b.shape, lambda i: (0, 0))]
    if n_layers > 1:
        w_last, b_last = params[-1]
        w_col = w_last.astype(jnp.float32).reshape(1, -1).T     # (in_f, 1)
        b_last = b_last.reshape(1, 1).astype(jnp.float32)
        flat += [w_col, b_last]
        in_specs += [pl.BlockSpec(w_col.shape, lambda i: (0, 0)),
                     pl.BlockSpec((1, 1), lambda i: (0, 0))]

    # --- VMEM budget -> scoped-VMEM limit (v5e default is only 16 MiB; cap at
    # 56 MiB to stay under v7x's 64 MiB physical per-TensorCore VMEM).
    item = jnp.dtype(x_dtype).itemsize
    widest = max([k] + [k * params[li][0].shape[0] for li in range(n_mm)])
    wbytes = sum(int(a.size) * a.dtype.itemsize for a in flat)
    vmem_est = (2 * rt_p * _round_up(D_p, 128) * item        # double-buffered X
                + 3 * _round_up(widest, 8) * rt_p * 4        # f32 working activations
                + 2 * k * rt_p * item                        # double-buffered output
                + 2 * wbytes                                 # resident weights/biases
                + (4 << 20))                                 # slack
    vmem_limit = int(min(max(vmem_est, 32 << 20), 56 << 20))

    kernel = _make_qos_kernel(n_layers, k)
    out = pl.pallas_call(
        kernel,
        out_shape=jax.ShapeDtypeStruct((num_tiles, k, rt_p), x_dtype),
        grid=(num_tiles,),
        in_specs=in_specs,
        out_specs=pl.BlockSpec((1, k, rt_p), lambda i: (i, 0, 0)),
        compiler_params=pltpu.CompilerParams(
            dimension_semantics=("parallel",),
            vmem_limit_bytes=vmem_limit),
    )(x_p, *flat)

    # Un-pack: out[t, j, rp] is original row (t*rt_p + rp)*k + j.  Ragged-tail
    # rows of the last block are compute-garbage and sliced off here.
    qos = out.transpose(0, 2, 1).reshape(num_tiles * rt_p * k)[:M].reshape(B, P)

    # TODO(synk): PrimitiveParameters.from_existing is a plain container
    # re-pack; emulate it as a dict merge (no compute involved).
    new_params = dict(primitive_params)
    new_params["qos"] = qos
    return new_params


def qos_reference(X, params):
    """Pure-JAX reference (f32) for correctness checking."""
    h = X.astype(jnp.float32)
    n_layers = len(params)
    for li, (w, b) in enumerate(params):
        h = h @ w.astype(jnp.float32).T + b.reshape(-1)
        if li < n_layers - 1:
            h = jnp.maximum(h, 0.0)
    return jax.nn.sigmoid(h)[..., 0]


if __name__ == "__main__":
    key = jax.random.PRNGKey(0)

    def run_case(seed, B, P, D, n_layers, hidden, dtype, row_tile, atol):
        kx, kp = jax.random.split(jax.random.fold_in(key, seed))
        X = jax.random.normal(kx, (B, P, D), jnp.float32)
        prim = {"translations": jax.random.normal(kp, (B, P, 3), jnp.float32)}
        params = init_qos_params(jax.random.fold_in(key, seed + 100),
                                 D, n_layers, hidden)
        ref = qos_reference(X, params)
        out = qos_forward(X.astype(dtype), prim, params, row_tile=row_tile)
        q = jax.block_until_ready(out["qos"])
        assert q.shape == (B, P), (q.shape, (B, P))
        assert q.dtype == jnp.dtype(dtype)
        assert "translations" in out
        err = float(jnp.max(jnp.abs(q.astype(jnp.float32) - ref)))
        assert err < atol, f"case seed={seed}: max abs err {err} >= {atol}"

    # f32, packed-row path (k = 128 // 32 = 4), 2 hidden layers + final VPU reduce.
    run_case(0, B=2, P=8, D=32, n_layers=3, hidden=32, dtype=jnp.float32,
             row_tile=16384, atol=1e-4)
    # bf16 production path (bf16 X / weights / inter-layer activations / output).
    run_case(1, B=2, P=8, D=32, n_layers=3, hidden=32, dtype=jnp.bfloat16,
             row_tile=16384, atol=3e-2)
    # Single-Linear config (module default n_layers=1).
    run_case(2, B=2, P=8, D=32, n_layers=1, hidden=128, dtype=jnp.float32,
             row_tile=16384, atol=1e-4)
    # Multi-tile grid with a ragged last block (M_p = 296, rt_p = 128 -> 3 steps).
    run_case(3, B=8, P=148, D=32, n_layers=2, hidden=32, dtype=jnp.bfloat16,
             row_tile=512, atol=3e-2)
    # Fallback un-packed path (128 % D != 0 -> k = 1) with a ragged tail.
    run_case(4, B=4, P=37, D=40, n_layers=2, hidden=32, dtype=jnp.float32,
             row_tile=16384, atol=1e-4)

    print("KERNEL_OK")
</pallas_src>

<mosaic_0001>
module attributes {stable_mosaic.version = 11 : i64} {
  func.func @kernel(%arg0: i32, %arg1: memref<4x128xf32, #tpu.memory_space<vmem>>, %arg2: memref<128x128xf32, #tpu.memory_space<vmem>>, %arg3: memref<128x1xf32, #tpu.memory_space<vmem>>, %arg4: memref<128x128xf32, #tpu.memory_space<vmem>>, %arg5: memref<128x1xf32, #tpu.memory_space<vmem>>, %arg6: memref<32x1xf32, #tpu.memory_space<vmem>>, %arg7: memref<1x1xf32, #tpu.memory_space<vmem>>, %arg8: memref<1x4x4xf32, #tpu.memory_space<vmem>>) attributes {dimension_semantics = [#tpu.dimension_semantics<parallel>], iteration_bounds = array<i64: 1>, scalar_prefetch = 0 : i64, scratch_operands = 0 : i64, tpu.core_type = #tpu.core_type<tc>, window_params = [{transform_indices = @transform_0, window_bounds = array<i64: 4, 128>}, {pipeline_mode = #tpu.pipeline_mode<synchronous>, transform_indices = @transform_1, window_bounds = array<i64: 128, 128>}, {pipeline_mode = #tpu.pipeline_mode<synchronous>, transform_indices = @transform_2, window_bounds = array<i64: 128, 1>}, {pipeline_mode = #tpu.pipeline_mode<synchronous>, transform_indices = @transform_3, window_bounds = array<i64: 128, 128>}, {pipeline_mode = #tpu.pipeline_mode<synchronous>, transform_indices = @transform_4, window_bounds = array<i64: 128, 1>}, {pipeline_mode = #tpu.pipeline_mode<synchronous>, transform_indices = @transform_5, window_bounds = array<i64: 32, 1>}, {pipeline_mode = #tpu.pipeline_mode<synchronous>, transform_indices = @transform_6, window_bounds = array<i64: 1, 1>}, {transform_indices = @transform_7, window_bounds = array<i64: 1, 4, 4>}]} {
    %c0 = arith.constant 0 : index
    %c0_0 = arith.constant 0 : index
    %0 = vector.load %arg1[%c0, %c0_0] : memref<4x128xf32, #tpu.memory_space<vmem>>, vector<4x128xf32>
    %c0_1 = arith.constant 0 : index
    %c0_2 = arith.constant 0 : index
    %1 = vector.load %arg2[%c0_1, %c0_2] : memref<128x128xf32, #tpu.memory_space<vmem>>, vector<128x128xf32>
    %cst = arith.constant dense<0.000000e+00> : vector<128x4xf32>
    %2 = tpu.matmul %1, %0, %cst {dimension_numbers = #tpu.dot_dimension_numbers<[1], [1], [0], [0], [0, 0, 1, 0], [], []>} : vector<128x128xf32>, vector<4x128xf32>, vector<128x4xf32> -> vector<128x4xf32>
    %c0_3 = arith.constant 0 : index
    %c0_4 = arith.constant 0 : index
    %3 = vector.load %arg3[%c0_3, %c0_4] : memref<128x1xf32, #tpu.memory_space<vmem>>, vector<128x1xf32>
    %4 = vector.broadcast %3 : vector<128x1xf32> to vector<128x4xf32>
    %5 = arith.addf %2, %4 : vector<128x4xf32>
    %cst_5 = arith.constant 0.000000e+00 : f32
    %6 = vector.broadcast %cst_5 : f32 to vector<128x4xf32>
    %7 = arith.maximumf %5, %6 : vector<128x4xf32>
    %c0_6 = arith.constant 0 : index
    %c0_7 = arith.constant 0 : index
    %8 = vector.load %arg4[%c0_6, %c0_7] : memref<128x128xf32, #tpu.memory_space<vmem>>, vector<128x128xf32>
    %cst_8 = arith.constant dense<0.000000e+00> : vector<128x4xf32>
    %9 = tpu.matmul %8, %7, %cst_8 {dimension_numbers = #tpu.dot_dimension_numbers<[1], [0], [0], [1], [0, 0, 1, 1], [], []>} : vector<128x128xf32>, vector<128x4xf32>, vector<128x4xf32> -> vector<128x4xf32>
    %c0_9 = arith.constant 0 : index
    %c0_10 = arith.constant 0 : index
    %10 = vector.load %arg5[%c0_9, %c0_10] : memref<128x1xf32, #tpu.memory_space<vmem>>, vector<128x1xf32>
    %11 = vector.broadcast %10 : vector<128x1xf32> to vector<128x4xf32>
    %12 = arith.addf %9, %11 : vector<128x4xf32>
    %cst_11 = arith.constant 0.000000e+00 : f32
    %13 = vector.broadcast %cst_11 : f32 to vector<128x4xf32>
    %14 = arith.maximumf %12, %13 : vector<128x4xf32>
    %c0_12 = arith.constant 0 : index
    %c0_13 = arith.constant 0 : index
    %15 = vector.load %arg6[%c0_12, %c0_13] : memref<32x1xf32, #tpu.memory_space<vmem>>, vector<32x1xf32>
    %c0_14 = arith.constant 0 : index
    %c0_15 = arith.constant 0 : index
    %16 = vector.load %arg7[%c0_14, %c0_15] : memref<1x1xf32, #tpu.memory_space<vmem>>, vector<1x1xf32>
    %17 = vector.extract_strided_slice %14 {offsets = [0, 0], sizes = [32, 4], strides = [1, 1]} : vector<128x4xf32> to vector<32x4xf32>
    %18 = vector.broadcast %15 : vector<32x1xf32> to vector<32x4xf32>
    %19 = arith.mulf %17, %18 : vector<32x4xf32>
    %cst_16 = arith.constant dense<0.000000e+00> : vector<4xf32>
    %20 = vector.multi_reduction <add>, %19, %cst_16 [0] : vector<32x4xf32> to vector<4xf32>
    %21 = vector.shape_cast %20 : vector<4xf32> to vector<1x4xf32>
    %22 = vector.extract_strided_slice %14 {offsets = [32, 0], sizes = [32, 4], strides = [1, 1]} : vector<128x4xf32> to vector<32x4xf32>
    %23 = vector.broadcast %15 : vector<32x1xf32> to vector<32x4xf32>
    %24 = arith.mulf %22, %23 : vector<32x4xf32>
    %cst_17 = arith.constant dense<0.000000e+00> : vector<4xf32>
    %25 = vector.multi_reduction <add>, %24, %cst_17 [0] : vector<32x4xf32> to vector<4xf32>
    %26 = vector.shape_cast %25 : vector<4xf32> to vector<1x4xf32>
    %27 = vector.extract_strided_slice %14 {offsets = [64, 0], sizes = [32, 4], strides = [1, 1]} : vector<128x4xf32> to vector<32x4xf32>
    %28 = vector.broadcast %15 : vector<32x1xf32> to vector<32x4xf32>
    %29 = arith.mulf %27, %28 : vector<32x4xf32>
    %cst_18 = arith.constant dense<0.000000e+00> : vector<4xf32>
    %30 = vector.multi_reduction <add>, %29, %cst_18 [0] : vector<32x4xf32> to vector<4xf32>
    %31 = vector.shape_cast %30 : vector<4xf32> to vector<1x4xf32>
    %32 = vector.extract_strided_slice %14 {offsets = [96, 0], sizes = [32, 4], strides = [1, 1]} : vector<128x4xf32> to vector<32x4xf32>
    %33 = vector.broadcast %15 : vector<32x1xf32> to vector<32x4xf32>
    %34 = arith.mulf %32, %33 : vector<32x4xf32>
    %cst_19 = arith.constant dense<0.000000e+00> : vector<4xf32>
    %35 = vector.multi_reduction <add>, %34, %cst_19 [0] : vector<32x4xf32> to vector<4xf32>
    %36 = vector.shape_cast %35 : vector<4xf32> to vector<1x4xf32>
    %37 = tpu.concatenate %21, %26, %31, %36 in 0 : vector<1x4xf32>, vector<1x4xf32>, vector<1x4xf32>, vector<1x4xf32> -> vector<4x4xf32>
    %38 = vector.broadcast %16 : vector<1x1xf32> to vector<4x4xf32>
    %39 = arith.addf %37, %38 : vector<4x4xf32>
    %40 = arith.negf %39 : vector<4x4xf32>
    %41 = math.exp %40 : vector<4x4xf32>
    %cst_20 = arith.constant 1.000000e+00 : f32
    %42 = vector.broadcast %cst_20 : f32 to vector<4x4xf32>
    %43 = arith.addf %42, %41 : vector<4x4xf32>
    %44 = arith.divf %42, %43 : vector<4x4xf32>
    %45 = vector.shape_cast %44 : vector<4x4xf32> to vector<1x4x4xf32>
    %c0_21 = arith.constant 0 : index
    %c0_22 = arith.constant 0 : index
    %c0_23 = arith.constant 0 : index
    %46 = vector.load %arg8[%c0_21, %c0_22, %c0_23] : memref<1x4x4xf32, #tpu.memory_space<vmem>>, vector<1x4x4xf32>
    tpu.vector_store %arg8[%c0_21, %c0_22, %c0_23], %45 {strides = array<i32>} : memref<1x4x4xf32, #tpu.memory_space<vmem>>, vector<1x4x4xf32>,
    return
  }
  func.func @transform_0(%arg0: i32) -> (i32, i32) {
    %c0_i32 = arith.constant 0 : i32
    %c0_i32_0 = arith.constant 0 : i32
    return %arg0, %c0_i32 : i32, i32
  }
  func.func @transform_1(%arg0: i32) -> (i32, i32) {
    %c0_i32 = arith.constant 0 : i32
    %c0_i32_0 = arith.constant 0 : i32
    %c0_i32_1 = arith.constant 0 : i32
    return %c0_i32, %c0_i32_0 : i32, i32
  }
  func.func @transform_2(%arg0: i32) -> (i32, i32) {
    %c0_i32 = arith.constant 0 : i32
    %c0_i32_0 = arith.constant 0 : i32
    %c0_i32_1 = arith.constant 0 : i32
    return %c0_i32, %c0_i32_0 : i32, i32
  }
  func.func @transform_3(%arg0: i32) -> (i32, i32) {
    %c0_i32 = arith.constant 0 : i32
    %c0_i32_0 = arith.constant 0 : i32
    %c0_i32_1 = arith.constant 0 : i32
    return %c0_i32, %c0_i32_0 : i32, i32
  }
  func.func @transform_4(%arg0: i32) -> (i32, i32) {
    %c0_i32 = arith.constant 0 : i32
    %c0_i32_0 = arith.constant 0 : i32
    %c0_i32_1 = arith.constant 0 : i32
    return %c0_i32, %c0_i32_0 : i32, i32
  }
  func.func @transform_5(%arg0: i32) -> (i32, i32) {
    %c0_i32 = arith.constant 0 : i32
    %c0_i32_0 = arith.constant 0 : i32
    %c0_i32_1 = arith.constant 0 : i32
    return %c0_i32, %c0_i32_0 : i32, i32
  }
  func.func @transform_6(%arg0: i32) -> (i32, i32) {
    %c0_i32 = arith.constant 0 : i32
    %c0_i32_0 = arith.constant 0 : i32
    %c0_i32_1 = arith.constant 0 : i32
    return %c0_i32, %c0_i32_0 : i32, i32
  }
  func.func @transform_7(%arg0: i32) -> (i32, i32, i32) {
    %c0_i32 = arith.constant 0 : i32
    %c0_i32_0 = arith.constant 0 : i32
    %c0_i32_1 = arith.constant 0 : i32
    return %arg0, %c0_i32, %c0_i32_0 : i32, i32, i32
  }
}

</mosaic_0001>

<bundles_post_ra>
// kernel: tpu_custom_call.1
= control target key start
LH: loop header
LB: loop body
LE: loop exit
PB: predicated region body
PF: predicated region fallthrough
CT: control target
= control target key end

     0   :  { %s1237_s0 = inlined_call_operand.vmem [shape: f32[4,128], index: 0, kind: input, shape index: {}]   ;;  %s1238_s1 = inlined_call_operand.vmem [shape: f32[128,128], index: 1, kind: input, shape index: {}]   ;;  %s1239_s2 = inlined_call_operand.vmem [shape: f32[128,1], index: 2, kind: input, shape index: {}]   ;;  %s1240_s3 = inlined_call_operand.vmem [shape: f32[128,128], index: 3, kind: input, shape index: {}]   ;;  %s1241_s4 = inlined_call_operand.vmem [shape: f32[128,1], index: 4, kind: input, shape index: {}]   ;;  %s1242_s5 = inlined_call_operand.vmem [shape: f32[32,1], index: 5, kind: input, shape index: {}]   ;;  %s1243_s6 = inlined_call_operand.<no memory space> [shape: f32[1,1], index: 6, kind: input, shape index: {}]   ;;  %s1244_s7 = inlined_call_operand.hbm [shape: f32[1,4,4], index: 7, kind: output, shape index: {}]  }
   0x1   :  { %v12_v0 = vstv %s1243_s6 }
   0x2   :  { %13 = vst [vmem:[#allocation2] sm:$0x1] %v12_v0 }
   0x3   :  { %v29_v1 = vld [vmem:[%s1237_s0] sm:$0xf]  ;;  %v31_v3 = vld [vmem:[%s1238_s1 + $0x8] sm:$0xff]  ;;  %v921_v4 = vmov 0   ;;  %v32_v6 = vld [vmem:[%s1238_s1 + $0x10] sm:$0xff] }
   0x4   :  { %v30_v2 = vld [vmem:[%s1238_s1] sm:$0xff]  ;;  %759 = vmatprep.subr.mxu0 %v29_v1  ;;  %891 = vset.pattern.permute.xlu0 %v921_v4  ;;  %v47_v7 = vld [vmem:[%s1239_s2 + $0x8] sm:$0xff]  ;;  %v48_v8 = vld [vmem:[%s1239_s2 + $0x10] sm:$0xff] }
   0x5   :  { %761 = vmatprep.mubr.f32.mxu0 %v30_v2  ;;  %760 = vmatpush3.xpose.msra.mxu0 %v29_v1  ;;  %v46_v5 = vld [vmem:[%s1239_s2] sm:$0xff]  ;;  %v33_v9 = vld [vmem:[%s1238_s1 + $0x18] sm:$0xff]  ;;  %v35_v13 = vld [vmem:[%s1238_s1 + $0x28] sm:$0xff] }
   0x6   :  { %64 = vperm.xlu0 %891, %v46_v5   ;;  %892 = vset.pattern.permute.xlu1 %v921_v4  ;;  %v49_v10 = vld [vmem:[%s1239_s2 + $0x18] sm:$0xff]  ;;  %v34_v11 = vld [vmem:[%s1238_s1 + $0x20] sm:$0xff]  ;;  %v51_v14 = vld [vmem:[%s1239_s2 + $0x28] sm:$0xff] }
   0x7   :  { %74 = vperm.xlu1 %892, %v48_v8   ;;  %v50_v12 = vld [vmem:[%s1239_s2 + $0x20] sm:$0xff]  ;;  %v36_v15 = vld [vmem:[%s1238_s1 + $0x30] sm:$0xff]  ;;  %v37_v17 = vld [vmem:[%s1238_s1 + $0x38] sm:$0xff] }
   0x8   :  { %762 = vmatmul.mubr.f32.vlgmr.msra.gmra.mrb[0].mxu0 %v31_v3  ;;  %v52_v16 = vld [vmem:[%s1239_s2 + $0x30] sm:$0xff]  ;;  %v53_v18 = vld [vmem:[%s1239_s2 + $0x38] sm:$0xff]  ;;  %v38_v19 = vld [vmem:[%s1238_s1 + $0x40] sm:$0xff] }
   0x9   :  { %764 = vmatprep.mubr.f32.mxu0 %v32_v6  ;;  %v54_v20 = vld [vmem:[%s1239_s2 + $0x40] sm:$0xff]  ;;  %v39_v21 = vld [vmem:[%s1238_s1 + $0x48] sm:$0xff] }
   0xa   :  { %69 = vperm.xlu0 %891, %v47_v7   ;;  %v55_v22 = vld [vmem:[%s1239_s2 + $0x48] sm:$0xff] }
   0xb   :  { %79 = vperm.xlu1 %892, %v49_v10  }
   0xc   :  { %765 = vmatmul.mubr.f32.gmra.mrb[2].mxu0 %v33_v9 }
   0xd   :  { %767 = vmatprep.mubr.f32.mxu0 %v34_v11 }
   0xe   :  { %84 = vperm.xlu0 %891, %v50_v12  }
   0xf   :  { %89 = vperm.xlu1 %892, %v51_v14  }
  0x10   :  { %768 = vmatmul.mubr.f32.gmra.mrb[4].mxu0 %v35_v13 }
  0x11   :  { %770 = vmatprep.mubr.f32.mxu0 %v36_v15 }
  0x12   :  { %94 = vperm.xlu0 %891, %v52_v16  }
  0x13   :  { %99 = vperm.xlu1 %892, %v53_v18  }
  0x14   :  { %771 = vmatmul.mubr.f32.gmra.mrb[6].mxu0 %v37_v17 }
  0x15   :  { %773 = vmatprep.mubr.f32.mxu0 %v38_v19 }
  0x16   :  { %14 = vsyncpa [#allocation4], 0  ;;  %v40_v23 = vld [vmem:[%s1238_s1 + $0x50] sm:$0xff]  ;;  %104 = vperm.xlu0 %891, %v54_v20   ;;  %v41_v25 = vld [vmem:[%s1238_s1 + $0x58] sm:$0xff]  ;;  %vm605_vm0 = vcmask 31744   ;;  %vm670_vm1 = vcmask 1040384  }
  0x17   :  { %v56_v24 = vld [vmem:[%s1239_s2 + $0x50] sm:$0xff]  ;;  %109 = vperm.xlu1 %892, %v55_v22   ;;  %v57_v26 = vld [vmem:[%s1239_s2 + $0x58] sm:$0xff]  ;;  %v42_v27 = vld [vmem:[%s1238_s1 + $0x60] sm:$0xff]  ;;  %vm672_vm2 = vcmask 1041408   ;;  %vm674_vm3 = vcmask 1042432   ;;  %vm692_vm4 = vcmask 27648  }
  0x18   :  { %774 = vmatmul.mubr.f32.gmra.mrb[8].mxu0 %v39_v21  ;;  %v58_v28 = vld [vmem:[%s1239_s2 + $0x60] sm:$0xff]  ;;  %v43_v29 = vld [vmem:[%s1238_s1 + $0x68] sm:$0xff]  ;;  %v44_v31 = vld [vmem:[%s1238_s1 + $0x70] sm:$0xff] }
  0x19   :  { %776 = vmatprep.mubr.f32.mxu0 %v40_v23  ;;  %v59_v30 = vld [vmem:[%s1239_s2 + $0x68] sm:$0xff]  ;;  %v60_v32 = vld [vmem:[%s1239_s2 + $0x70] sm:$0xff]  ;;  %v45_v33 = vld [vmem:[%s1238_s1 + $0x78] sm:$0xff] }
  0x1a   :  { %114 = vperm.xlu0 %891, %v56_v24   ;;  %v61_v34 = vld [vmem:[%s1239_s2 + $0x78] sm:$0xff]  ;;  %v319_v35 = vld [vmem:[%s1241_s4] sm:$0xff]  ;;  %v320_v36 = vld [vmem:[%s1241_s4 + $0x8] sm:$0xff] }
  0x1b   :  { %119 = vperm.xlu1 %892, %v57_v26   ;;  %v323_v37 = vld [vmem:[%s1241_s4 + $0x20] sm:$0xff]  ;;  %v324_v38 = vld [vmem:[%s1241_s4 + $0x28] sm:$0xff]  ;;  %v321_v41 = vld [vmem:[%s1241_s4 + $0x10] sm:$0xff] }
  0x1c   :  { %777 = vmatmul.mubr.f32.gmra.mrb[10].mxu0 %v41_v25  ;;  %v327_v39 = vld [vmem:[%s1241_s4 + $0x40] sm:$0xff]  ;;  %v328_v40 = vld [vmem:[%s1241_s4 + $0x48] sm:$0xff]  ;;  %v325_v42 = vld [vmem:[%s1241_s4 + $0x30] sm:$0xff] }
  0x1d   :  { %779 = vmatprep.mubr.f32.mxu0 %v42_v27  ;;  %v331_v43 = vld [vmem:[%s1241_s4 + $0x60] sm:$0xff]  ;;  %v332_v44 = vld [vmem:[%s1241_s4 + $0x68] sm:$0xff]  ;;  %v329_v45 = vld [vmem:[%s1241_s4 + $0x50] sm:$0xff] }
  0x1e   :  { %124 = vperm.xlu0 %891, %v58_v28   ;;  %v322_v46 = vld [vmem:[%s1241_s4 + $0x18] sm:$0xff]  ;;  %v333_v48 = vld [vmem:[%s1241_s4 + $0x70] sm:$0xff]  ;;  %v576_v49 = vld [vmem:[%s1242_s5] sm:$0xff] }
  0x1f   :  { %129 = vperm.xlu1 %892, %v59_v30   ;;  %v326_v47 = vld [vmem:[%s1241_s4 + $0x38] sm:$0xff]  ;;  %v577_v50 = vld [vmem:[%s1242_s5 + $0x8] sm:$0xff]  ;;  %v578_v53 = vld [vmem:[%s1242_s5 + $0x10] sm:$0xff] }
  0x20   :  { %780 = vmatmul.mubr.f32.gmra.mrb[12].mxu0 %v43_v29  ;;  %v330_v51 = vld [vmem:[%s1241_s4 + $0x58] sm:$0xff]  ;;  %v708_v55 = vld [vmem:[#allocation2] ss:$0 sm:$0xff]  ;;  %v309_v57 = vld [vmem:[%s1240_s3 + $0x30] sm:$0xff] }
  0x21   :  { %782 = vmatprep.mubr.f32.mxu0 %v44_v31  ;;  %v334_v52 = vld [vmem:[%s1241_s4 + $0x78] sm:$0xff]  ;;  %v303_v56 = vld [vmem:[%s1240_s3] sm:$0xff]  ;;  %826 = vmatprep.mubr.f32.mxu1 %v309_v57 }
  0x22   :  { %134 = vperm.xlu0 %891, %v60_v32   ;;  %v579_v54 = vld [vmem:[%s1242_s5 + $0x18] sm:$0xff] }
  0x23   :  { %139 = vperm.xlu1 %892, %v61_v34  }
  0x24   :  { %783 = vmatmul.mubr.f32.gmra.mrb[14].mxu0 %v45_v33 }
  0x25   :  { %817 = vmatprep.mubr.f32.mxu0 %v303_v56 }
  0x26   :  { %337 = vperm.xlu0 %891, %v319_v35  }
  0x27   :  { %342 = vperm.xlu1 %892, %v320_v36  }
  0x2a   :  { %357 = vperm.xlu0 %891, %v323_v37  }
  0x2b   :  { %362 = vperm.xlu1 %892, %v324_v38  }
  0x2e   :  { %377 = vperm.xlu0 %891, %v327_v39  }
  0x2f   :  { %382 = vperm.xlu1 %892, %v328_v40  }
  0x32   :  { %347 = vperm.xlu0 %891, %v321_v41  }
  0x33   :  { %367 = vperm.xlu1 %892, %v325_v42  }
  0x36   :  { %397 = vperm.xlu0 %891, %v331_v43  }
  0x37   :  { %402 = vperm.xlu1 %892, %v332_v44  }
  0x3a   :  { %387 = vperm.xlu0 %891, %v329_v45  }
  0x3b   :  { %352 = vperm.xlu1 %892, %v322_v46  }
  0x3e   :  { %372 = vperm.xlu0 %891, %v326_v47  }
  0x3f   :  { %407 = vperm.xlu1 %892, %v333_v48  }
  0x42   :  { %583 = vperm.xlu0 %891, %v576_v49  }
  0x43   :  { %588 = vperm.xlu1 %892, %v577_v50  }
  0x46   :  { %392 = vperm.xlu0 %891, %v330_v51  }
  0x47   :  { %412 = vperm.xlu1 %892, %v334_v52  }
  0x4a   :  { %593 = vperm.xlu0 %891, %v578_v53  }
  0x4b   :  { %598 = vperm.xlu1 %892, %v579_v54  }
  0x4e   :  { %682 = vperm.xlu0 %891, %v708_v55  }
  0x85   :  { %v65_v59 = vpop.permute.xlu0 %64 }
  0x86   :  { %v75_v58 = vpop.permute.xlu1 %74 }
  0x89   :  { %v70_v61 = vpop.permute.xlu0 %69 }
  0x8a   :  { %v80_v60 = vpop.permute.xlu1 %79 }
  0x8d   :  { %v85_v63 = vpop.permute.xlu0 %84 }
  0x8e   :  { %v90_v62 = vpop.permute.xlu1 %89 }
  0x91   :  { %v95_v8 = vpop.permute.xlu0 %94 }
  0x92   :  { %v100_v5 = vpop.permute.xlu1 %99 }
  0x95   :  { %v105_v21 = vpop.permute.xlu0 %104 }
  0x96   :  { %v110_v18 = vpop.permute.xlu1 %109 }
  0x99   :  { %v115_v33 = vpop.permute.xlu0 %114 }
  0x9a   :  { %v120_v30 = vpop.permute.xlu1 %119 }
  0x9d   :  { %v125_v46 = vpop.permute.xlu0 %124 }
  0x9e   :  { %v130_v43 = vpop.permute.xlu1 %129 }
  0xa2   :  { %v140_v55 = vpop.permute.xlu1 %139 }
  0xdb   :  { %v763_v0 = vpop.f32.mrb[0].mxu0 }
  0xdc   :  { %v214_v1 = vadd.f32 %v763_v0, %v70_v61  ;;  %v208_v2 = vpop.f32.mrb[1].mxu0 }
  0xdd   :  { %v209_v3 = vadd.f32 %v208_v2, %v65_v59  ;;  %v304_v2 = vld [vmem:[%s1240_s3 + $0x8] sm:$0xff] }
  0xde   :  { %v288_v4 = vmax.f32 %v214_v1, 0.0 }
  0xdf   :  { %v287_v6 = vmax.f32 %v209_v3, 0.0  ;;  %v766_v7 = vpop.f32.mrb[2].mxu0  ;;  %v310_v3 = vld [vmem:[%s1240_s3 + $0x38] sm:$0xff] }
  0xe0   :  { %v224_v9 = vadd.f32 %v766_v7, %v80_v60  ;;  %v218_v10 = vpop.f32.mrb[3].mxu0  ;;  %v312_v7 = vld [vmem:[%s1240_s3 + $0x48] sm:$0xff] }
  0xe1   :  { %v841_v11 = vpack.c.bf16 %v288_v4, %v287_v6  ;;  %v219_v12 = vadd.f32 %v218_v10, %v75_v58  ;;  %v135_v58 = vpop.permute.xlu0 %134  ;;  %v305_v4 = vld [vmem:[%s1240_s3 + $0x10] sm:$0xff]  ;;  %v306_v6 = vld [vmem:[%s1240_s3 + $0x18] sm:$0xff]  ;;  %v308_v10 = vld [vmem:[%s1240_s3 + $0x28] sm:$0xff] }
  0xe2   :  { %v290_v13 = vmax.f32 %v224_v9, 0.0  ;;  %v313_v9 = vld [vmem:[%s1240_s3 + $0x50] sm:$0xff] }
  0xe3   :  { %v289_v14 = vmax.f32 %v219_v12, 0.0  ;;  %v769_v15 = vpop.f32.mrb[4].mxu0  ;;  %842 = vmatprep.subr.bf16.mxu0 %v841_v11  ;;  %873 = vmatprep.subr.bf16.mxu1 %v841_v11  ;;  %v315_v12 = vld [vmem:[%s1240_s3 + $0x60] sm:$0xff] }
  0xe4   :  { %v234_v16 = vadd.f32 %v769_v15, %v90_v62  ;;  %v228_v17 = vpop.f32.mrb[5].mxu0  ;;  %844 = vmatpush3.bf16.msra.mxu0 %v841_v11  ;;  %881 = vmatpush3.bf16.msra.mxu1 %v841_v11  ;;  %v314_v11 = vld [vmem:[%s1240_s3 + $0x58] sm:$0xff] }
  0xe5   :  { %v845_v19 = vpack.c.bf16 %v290_v13, %v289_v14  ;;  %v229_v20 = vadd.f32 %v228_v17, %v85_v63  ;;  %v316_v13 = vld [vmem:[%s1240_s3 + $0x68] sm:$0xff]  ;;  %v317_v14 = vld [vmem:[%s1240_s3 + $0x70] sm:$0xff]  ;;  %v318_v15 = vld [vmem:[%s1240_s3 + $0x78] sm:$0xff]  ;;  %v343_v17 = vpop.permute.xlu1 %342 }
  0xe6   :  { %v292_v22 = vmax.f32 %v234_v16, 0.0  ;;  %v338_v16 = vpop.permute.xlu0 %337 }
  0xe7   :  { %v291_v23 = vmax.f32 %v229_v20, 0.0  ;;  %v772_v24 = vpop.f32.mrb[6].mxu0  ;;  %846 = vmatprep.subr.bf16.mxu0 %v845_v19  ;;  %874 = vmatprep.subr.bf16.mxu1 %v845_v19 }
  0xe8   :  { %v244_v25 = vadd.f32 %v772_v24, %v100_v5  ;;  %v238_v26 = vpop.f32.mrb[7].mxu0  ;;  %848 = vmatpush3.bf16.msra.mxu0 %v845_v19  ;;  %882 = vmatpush3.bf16.msra.mxu1 %v845_v19  ;;  %v311_v5 = vld [vmem:[%s1240_s3 + $0x40] sm:$0xff] }
  0xe9   :  { %v849_v27 = vpack.c.bf16 %v292_v22, %v291_v23  ;;  %v239_v28 = vadd.f32 %v238_v26, %v95_v8  ;;  %v307_v8 = vld [vmem:[%s1240_s3 + $0x20] sm:$0xff]  ;;  %v363_v19 = vpop.permute.xlu1 %362  ;;  %s922_s3 = smov [#allocation3]  }
  0xea   :  { %v294_v29 = vmax.f32 %v244_v25, 0.0  ;;  %s700_s4 = sshll.u32 %s922_s3, 4  ;;  %s701_s4 = int_to_ptr.vmem [resolvable:$true] %s700_s4 }
  0xeb   :  { %v293_v31 = vmax.f32 %v239_v28, 0.0  ;;  %v775_v32 = vpop.f32.mrb[8].mxu0  ;;  %850 = vmatprep.subr.bf16.mxu0 %v849_v27  ;;  %875 = vmatprep.subr.bf16.mxu1 %v849_v27  ;;  %s897_s5 = scalar_lea.vmem %s701_s4, 64  ;;  %p902_p1 = scmp.lt.s32.totalorder %s701_s4, %s701_s4 }
  0xec   :  { %v254_v34 = vadd.f32 %v775_v32, %v110_v18  ;;  %v248_v35 = vpop.f32.mrb[9].mxu0  ;;  %852 = vmatpush3.bf16.msra.mxu0 %v849_v27  ;;  %883 = vmatpush3.bf16.msra.mxu1 %v849_v27  ;;  %v358_v18 = vpop.permute.xlu0 %357  ;;  %p898_p0 = scmp.ne.s32.totalorder %s701_s4, %s897_s5  ;;  %p903_p2 = scmp.lt.s32.totalorder %s897_s5, %s897_s5 }
  0xed   :  { %v853_v36 = vpack.c.bf16 %v294_v29, %v293_v31  ;;  %v249_v37 = vadd.f32 %v248_v35, %v105_v21  ;;  %v383_v21 = vpop.permute.xlu1 %382 }
  0xee   :  { %v296_v38 = vmax.f32 %v254_v34, 0.0  ;;  %p904_p3 = por %p903_p2, %p902_p1 }
  0xef   :  { %v295_v39 = vmax.f32 %v249_v37, 0.0  ;;  %v778_v40 = vpop.f32.mrb[10].mxu0  ;;  %854 = vmatprep.subr.bf16.mxu0 %v853_v36  ;;  %876 = vmatprep.subr.bf16.mxu1 %v853_v36 }
  0xf0   :  { %v264_v41 = vadd.f32 %v778_v40, %v120_v30  ;;  %v258_v42 = vpop.f32.mrb[11].mxu0  ;;  %856 = vmatpush3.bf16.msra.mxu0 %v853_v36  ;;  %884 = vmatpush3.bf16.msra.mxu1 %v853_v36  ;;  %v378_v20 = vpop.permute.xlu0 %377  ;;  %p905_p4 = pnand %p904_p3, %p898_p0 }
  0xf1   :  { %v857_v44 = vpack.c.bf16 %v296_v38, %v295_v39  ;;  %v259_v45 = vadd.f32 %v258_v42, %v115_v33  ;;  %v368_v23 = vpop.permute.xlu1 %367 }
  0xf2   :  { %v298_v47 = vmax.f32 %v264_v41, 0.0 }
  0xf3   :  { %v297_v48 = vmax.f32 %v259_v45, 0.0  ;;  %v781_v49 = vpop.f32.mrb[12].mxu0  ;;  %858 = vmatprep.subr.bf16.mxu0 %v857_v44  ;;  %877 = vmatprep.subr.bf16.mxu1 %v857_v44 }
  0xf4   :  { %v274_v50 = vadd.f32 %v781_v49, %v130_v43  ;;  %v268_v51 = vpop.f32.mrb[13].mxu0  ;;  %860 = vmatpush3.bf16.msra.mxu0 %v857_v44  ;;  %885 = vmatpush3.bf16.msra.mxu1 %v857_v44  ;;  %v348_v22 = vpop.permute.xlu0 %347 }
  0xf5   :  { %v861_v52 = vpack.c.bf16 %v298_v47, %v297_v48  ;;  %v269_v53 = vadd.f32 %v268_v51, %v125_v46  ;;  %v1175_v25 = vpop.permute.xlu1 %402 }
  0xf6   :  { %v300_v54 = vmax.f32 %v274_v50, 0.0 }
  0xf7   :  { %v299_v56 = vmax.f32 %v269_v53, 0.0  ;;  %v784_v57 = vpop.f32.mrb[14].mxu0  ;;  %862 = vmatprep.subr.bf16.mxu0 %v861_v52  ;;  %878 = vmatprep.subr.bf16.mxu1 %v861_v52 }
  0xf8   :  { %v284_v59 = vadd.f32 %v784_v57, %v140_v55  ;;  %v278_v60 = vpop.f32.mrb[15].mxu0  ;;  %864 = vmatpush3.bf16.msra.mxu0 %v861_v52  ;;  %886 = vmatpush3.bf16.msra.mxu1 %v861_v52  ;;  %v1173_v24 = vpop.permute.xlu0 %397 }
  0xf9   :  { %v865_v61 = vpack.c.bf16 %v300_v54, %v299_v56  ;;  %v279_v62 = vadd.f32 %v278_v60, %v135_v58  ;;  %v353_v27 = vpop.permute.xlu1 %352 }
  0xfa   :  { %v302_v63 = vmax.f32 %v284_v59, 0.0 }
  0xfb   :  { %v301_v0 = vmax.f32 %v279_v62, 0.0  ;;  %866 = vmatprep.subr.bf16.mxu0 %v865_v61  ;;  %879 = vmatprep.subr.bf16.mxu1 %v865_v61 }
  0xfc   :  { %868 = vmatpush3.bf16.msra.mxu0 %v865_v61  ;;  %887 = vmatpush3.bf16.msra.mxu1 %v865_v61  ;;  %v388_v26 = vpop.permute.xlu0 %387 }
  0xfd   :  { %v869_v1 = vpack.c.bf16 %v302_v63, %v301_v0  ;;  %v1177_v29 = vpop.permute.xlu1 %407 }
  0xff   :  { %870 = vmatprep.subr.bf16.mxu0 %v869_v1  ;;  %880 = vmatprep.subr.bf16.mxu1 %v869_v1 }
 0x100   :  { %872 = vmatpush3.bf16.msra.mxu0 %v869_v1  ;;  %888 = vmatpush3.bf16.msra.mxu1 %v869_v1  ;;  %v373_v28 = vpop.permute.xlu0 %372 }
 0x101   :  { %v1181_v31 = vpop.permute.xlu1 %588 }
 0x103   :  { %818 = vmatmul.mubr.f32.vlgmr.msra.gmra.mrb[16].mxu0 %v304_v2  ;;  %827 = vmatmul.mubr.f32.vlgmr.msra.gmra.mrb[0].mxu1 %v310_v3 }
 0x104   :  { %820 = vmatprep.mubr.f32.mxu0 %v305_v4  ;;  %829 = vmatprep.mubr.f32.mxu1 %v311_v5  ;;  %v1179_v30 = vpop.permute.xlu0 %583 }
 0x105   :  { %v1183_v33 = vpop.permute.xlu1 %412 }
 0x107   :  { %821 = vmatmul.mubr.f32.gmra.mrb[18].mxu0 %v306_v6  ;;  %830 = vmatmul.mubr.f32.gmra.mrb[2].mxu1 %v312_v7 }
 0x108   :  { %823 = vmatprep.mubr.f32.mxu0 %v307_v8  ;;  %832 = vmatprep.mubr.f32.mxu1 %v313_v9  ;;  %v393_v32 = vpop.permute.xlu0 %392 }
 0x109   :  { %v1186_v53 = vpop.permute.xlu1 %598 }
 0x10b   :  { %824 = vmatmul.mubr.f32.gmra.mrb[20].mxu0 %v308_v10  ;;  %833 = vmatmul.mubr.f32.gmra.mrb[4].mxu1 %v314_v11 }
 0x10c   :  { %835 = vmatprep.mubr.f32.mxu1 %v315_v12  ;;  %v1189_v57 = vpop.permute.xlu0 %593 }
 0x10f   :  { %836 = vmatmul.mubr.f32.gmra.mrb[6].mxu1 %v316_v13 }
 0x110   :  { %838 = vmatprep.mubr.f32.mxu1 %v317_v14 }
 0x113   :  { %839 = vmatmul.mubr.f32.gmra.mrb[8].mxu1 %v318_v15 }
 0x1d6   :  { %v819_v34 = vpop.f32.mrb[16].mxu0  ;;  %v828_v35 = vpop.f32.mrb[0].mxu1 }
 0x1d7   :  { %v487_v36 = vadd.f32 %v819_v34, %v343_v17  ;;  %v517_v37 = vadd.f32 %v828_v35, %v373_v28  ;;  %v481_v38 = vpop.f32.mrb[17].mxu0  ;;  %v511_v39 = vpop.f32.mrb[1].mxu1 }
 0x1d8   :  { %v482_v40 = vadd.f32 %v481_v38, %v338_v16  ;;  %v512_v41 = vadd.f32 %v511_v39, %v368_v23 }
 0x1d9   :  { %v561_v42 = vmax.f32 %v487_v36, 0.0  ;;  %v567_v43 = vmax.f32 %v517_v37, 0.0 }
 0x1da   :  { %v560_v44 = vmax.f32 %v482_v40, 0.0  ;;  %v566_v45 = vmax.f32 %v512_v41, 0.0  ;;  %v822_v46 = vpop.f32.mrb[18].mxu0  ;;  %v831_v47 = vpop.f32.mrb[2].mxu1 }
 0x1db   :  { %v602_v48 = vmul.f32 %v1181_v31, %v561_v42  ;;  %v497_v49 = vadd.f32 %v822_v46, %v353_v27  ;;  %v527_v50 = vadd.f32 %v831_v47, %v383_v21  ;;  %v491_v51 = vpop.f32.mrb[19].mxu0  ;;  %v521_v52 = vpop.f32.mrb[3].mxu1  ;;  %v622_v59 = vmul.f32 %v1186_v53, %v567_v43 }
 0x1dc   :  { %v601_v54 = vmul.f32 %v1179_v30, %v560_v44  ;;  %v492_v55 = vadd.f32 %v491_v51, %v348_v22  ;;  %v522_v56 = vadd.f32 %v521_v52, %v378_v20  ;;  %v621_v63 = vmul.f32 %v1189_v57, %v566_v45 }
 0x1dd   :  { %v607_v58 = vsel %vm605_vm0, %v602_v48, 0.0  ;;  %v563_v60 = vmax.f32 %v497_v49, 0.0  ;;  %v569_v61 = vmax.f32 %v527_v50, 0.0  ;;  %v628_v14 = vsel %vm605_vm0, %v622_v59, 0.0 }
 0x1de   :  { %v606_v62 = vsel %vm605_vm0, %v601_v54, 0.0  ;;  %v562_v0 = vmax.f32 %v492_v55, 0.0  ;;  %v568_v1 = vmax.f32 %v522_v56, 0.0  ;;  %v825_v2 = vpop.f32.mrb[20].mxu0  ;;  %v834_v3 = vpop.f32.mrb[4].mxu1  ;;  %v626_v42 = vsel %vm605_vm0, %v621_v63, 0.0 }
 0x1df   :  { %v608_v4 = vadd.f32 %v607_v58, %v606_v62  ;;  %v604_v5 = vmul.f32 %v1186_v53, %v563_v60  ;;  %v637_v6 = vmul.f32 %v1181_v31, %v569_v61  ;;  %v507_v7 = vadd.f32 %v825_v2, %v363_v19  ;;  %v501_v8 = vpop.f32.mrb[21].mxu0  ;;  %v531_v9 = vpop.f32.mrb[5].mxu1 }
 0x1e0   :  { %v603_v10 = vmul.f32 %v1189_v57, %v562_v0  ;;  %v636_v11 = vmul.f32 %v1179_v30, %v568_v1  ;;  %v537_v12 = vadd.f32 %v834_v3, %v393_v32  ;;  %v502_v13 = vadd.f32 %v501_v8, %v358_v18 }
 0x1e1   :  { %v641_v15 = vsel %vm605_vm0, %v637_v6, 0.0  ;;  %v565_v16 = vmax.f32 %v507_v7, 0.0  ;;  %v532_v17 = vadd.f32 %v531_v9, %v388_v26  ;;  %v611_v18 = vsel %vm605_vm0, %v604_v5, 0.0 }
 0x1e2   :  { %v609_v20 = vsel %vm605_vm0, %v603_v10, 0.0  ;;  %v640_v21 = vsel %vm605_vm0, %v636_v11, 0.0  ;;  %v571_v22 = vmax.f32 %v537_v12, 0.0  ;;  %v564_v19 = vmax.f32 %v502_v13, 0.0  ;;  %v837_v23 = vpop.f32.mrb[6].mxu1 }
 0x1e3   :  { %v610_v27 = vadd.f32 %v609_v20, %v608_v4  ;;  %v642_v28 = vadd.f32 %v641_v15, %v640_v21  ;;  %v620_v34 = vmul.f32 %v1181_v31, %v565_v16  ;;  %v570_v35 = vmax.f32 %v532_v17, 0.0  ;;  %v541_v32 = vpop.f32.mrb[7].mxu1 }
 0x1e4   :  { %v619_v36 = vmul.f32 %v1179_v30, %v564_v19  ;;  %v547_v37 = vadd.f32 %v837_v23, %v1175_v25  ;;  %v542_v26 = vadd.f32 %v541_v32, %v1173_v24  ;;  %v639_v40 = vmul.f32 %v1186_v53, %v571_v22 }
 0x1e5   :  { %v612_v38 = vadd.f32 %v611_v18, %v610_v27  ;;  %v624_v39 = vsel %vm605_vm0, %v620_v34, 0.0  ;;  %v638_v41 = vmul.f32 %v1189_v57, %v570_v35  ;;  %v683_v35 = vpop.permute.xlu0 %682 }
 0x1e6   :  { %v623_v43 = vsel %vm605_vm0, %v619_v36, 0.0  ;;  %v573_v44 = vmax.f32 %v547_v37, 0.0  ;;  %v572_v45 = vmax.f32 %v542_v26, 0.0  ;;  %v840_v46 = vpop.f32.mrb[8].mxu1  ;;  %v645_v56 = vsel %vm605_vm0, %v639_v40, 0.0 }
 0x1e7   :  { %v613_v47 = vrot.slane %v612_v38, 4  ;;  %v625_v48 = vadd.f32 %v624_v39, %v623_v43  ;;  %v643_v25 = vsel %vm605_vm0, %v638_v41, 0.0  ;;  %v557_v24 = vadd.f32 %v840_v46, %v1183_v33  ;;  %v551_v49 = vpop.f32.mrb[9].mxu1 }
 0x1e8   :  { %v644_v50 = vadd.f32 %v643_v25, %v642_v28  ;;  %v654_v51 = vmul.f32 %v1181_v31, %v573_v44  ;;  %v653_v52 = vmul.f32 %v1179_v30, %v572_v45  ;;  %v552_v54 = vadd.f32 %v551_v49, %v1177_v29 }
 0x1e9   :  { %v614_v55 = vadd.f32 %v613_v47, %v612_v38  ;;  %v627_v58 = vadd.f32 %v626_v42, %v625_v48  ;;  %v575_v59 = vmax.f32 %v557_v24, 0.0 }
 0x1ea   :  { %v646_v60 = vadd.f32 %v645_v56, %v644_v50  ;;  %v658_v61 = vsel %vm605_vm0, %v654_v51, 0.0  ;;  %v657_v62 = vsel %vm605_vm0, %v653_v52, 0.0  ;;  %v574_v63 = vmax.f32 %v552_v54, 0.0 }
 0x1eb   :  { %v615_v33 = vrot.slane %v614_v55, 2  ;;  %v629_v0 = vadd.f32 %v628_v14, %v627_v58  ;;  %v659_v1 = vadd.f32 %v658_v61, %v657_v62  ;;  %v656_v31 = vmul.f32 %v1186_v53, %v575_v59 }
 0x1ec   :  { %v647_v2 = vrot.slane %v646_v60, 4  ;;  %v655_v30 = vmul.f32 %v1189_v57, %v574_v63 }
 0x1ed   :  { %v630_v29 = vrot.slane %v629_v0, 4  ;;  %v616_v5 = vadd.f32 %v615_v33, %v614_v55  ;;  %v662_v9 = vsel %vm605_vm0, %v656_v31, 0.0 }
 0x1ee   :  { %v648_v3 = vadd.f32 %v647_v2, %v646_v60  ;;  %v660_v4 = vsel %vm605_vm0, %v655_v30, 0.0 }
 0x1ef   :  { %v631_v6 = vadd.f32 %v630_v29, %v629_v0  ;;  %v661_v7 = vadd.f32 %v660_v4, %v659_v1  ;;  %v617_v13 = vrot.slane %v616_v5, 1 }
 0x1f0   :  { %v649_v8 = vrot.slane %v648_v3, 2 }
 0x1f1   :  { %v632_v10 = vrot.slane %v631_v6, 2  ;;  %v663_v11 = vadd.f32 %v662_v9, %v661_v7  ;;  %v618_v57 = vadd.f32 %v617_v13, %v616_v5 }
 0x1f2   :  { %v650_v12 = vadd.f32 %v649_v8, %v648_v3 }
 0x1f3   :  { %v633_v14 = vadd.f32 %v632_v10, %v631_v6  ;;  %v664_v15 = vrot.slane %v663_v11, 4 }
 0x1f4   :  { %v651_v16 = vrot.slane %v650_v12, 1 }
 0x1f5   :  { %v634_v53 = vrot.slane %v633_v14, 1  ;;  %v665_v17 = vadd.f32 %v664_v15, %v663_v11 }
 0x1f6   :  { %v652_v22 = vadd.f32 %v651_v16, %v650_v12 }
 0x1f7   :  { %v635_v20 = vadd.f32 %v634_v53, %v633_v14  ;;  %v666_v21 = vrot.slane %v665_v17, 2 }
 0x1f9   :  { %v671_v19 = vsel %vm670_vm1, %v618_v57, %v635_v20  ;;  %v667_v23 = vadd.f32 %v666_v21, %v665_v17 }
 0x1fa   :  { %v673_v27 = vsel %vm672_vm2, %v671_v19, %v652_v22 }
 0x1fb   :  { %v668_v28 = vrot.slane %v667_v23, 1 }
 0x1fd   :  { %v669_v34 = vadd.f32 %v668_v28, %v667_v23 }
 0x1ff   :  { %v675_v32 = vsel %vm674_vm3, %v673_v27, %v669_v34 }
 0x200   :  { %v685_v18 = vadd.f32 %v683_v35, %v675_v32 }
 0x202   :  { %v709_v36 = vmul.f32 -1.442695, %v685_v18 }
 0x204   :  { %893 = vpow2.f32 %v709_v36 }
 0x20e   :  { %v894_v37 = vpop.eup %893 }
 0x20f   :  { %v689_v26 = vadd.f32 1.0, %v894_v37 }
 0x211   :  { %895 = vrcp.f32 %v689_v26 }
 0x21b   :  { %v896_v38 = vpop.eup %895 }
 0x21c   :  { %693 = vst.msk [vmem:[#allocation3] sm:$0xf] %vm692_vm4, %v896_v38 }
 0x21d   :  { %908 = shalt.err (!%p905_p4)
}
 0x21e   :  { %s909_s6 = scalar_lea.hbm %s1244_s7, 64 }
 0x21f   :  { %p910_p5 = scmp.ne.s32.totalorder %s1244_s7, %s909_s6  ;;  %p913_p6 = scmp.lt.u32.totalorder %s909_s6, %s1244_s7 }
 0x221   :  { %p915_p7 = pnand %p913_p6, %p910_p5 }
 0x223   :  { %918 = shalt.err (!%p915_p7)
}
 0x224   :  { %703 = dma.vmem_to_hbm [thread:$0]  %s701_s4, 64, %s1244_s7, [#allocation4]  }
 0x225   :  { %919 = dma.done.wait [#allocation4], 64  }
 0x226   :  { %920 = vsyncadd [#allocation4], 4294967232 }
 0x227   :  { %707 = vsyncpa [#allocation4], 1 }

</bundles_post_ra>
